<compile_context>
chip_gen: v5e
topology: v5e:2x2
jax: 0.10.0
libtpu: 0.0.40
codegen_flags: <defaults>
</compile_context>

<pallas_src>
import jax
import jax.numpy as jnp
from jax.experimental import pallas as pl
from jax.experimental.pallas import tpu as pltpu


def _pairwise_bilinear_kernel(x_i_ref, x_j_ref, w_ref, o_ref, y_ref):
    # x_i_ref: (tm, D) row slab    (block index constant in j -> fetched once per (b, i))
    # x_j_ref: (tn, D) column slab (re-streamed along j)
    # w_ref:   (D, D)  full weight (constant block, single-buffered)
    # o_ref:   (tm, tn) output tile
    # y_ref:   (tm, D) VMEM scratch caching y_i = x_i @ W.T across the j loop
    j = pl.program_id(2)

    @pl.when(j == 0)
    def _():
        # y_i = x_i @ W.T : contract last dims of both operands (no materialized W.T).
        y = jax.lax.dot_general(
            x_i_ref[...], w_ref[...],
            dimension_numbers=(((1,), (1,)), ((), ())),
            preferred_element_type=jnp.float32,
        )
        # Cached in compute dtype (bf16): one extra rounding of the intermediate,
        # half the scratch VMEM and bf16 MXU inputs for the second matmul.
        y_ref[...] = y.astype(y_ref.dtype)

    # out_ij = y_i @ x_j.T : again contract last dims (no materialized x.T).
    o_ref[...] = jax.lax.dot_general(
        y_ref[...], x_j_ref[...],
        dimension_numbers=(((1,), (1,)), ((), ())),
        preferred_element_type=jnp.float32,
    ).astype(o_ref.dtype)


def _vmem_budget_bytes() -> int:
    """~75% of this chip's physical VMEM, capped at 100 MiB (conservative fallback: v7x)."""
    cap = 64 << 20  # v7x per-TensorCore VMEM (the smallest of v5e/v6e/v7x)
    try:
        info = pltpu.get_tpu_info()
        cap = int(getattr(info, "vmem_capacity_bytes", cap))
    except Exception:
        pass
    return int(min(int(cap * 0.75), 100 << 20))


def _select_tiles(N, D, cb, ob, budget):
    """Pick (tm, tn).  tm grown first (divides x_j re-stream traffic), then tn."""
    def usage(tm, tn):
        return (2 * tm * D * cb        # x_i, double-buffered
                + 2 * tn * D * cb      # x_j, double-buffered
                + 2 * D * D * cb       # weight (budgeted double even if single-buffered)
                + 2 * tm * tn * ob     # output tile, double-buffered
                + tm * D * cb)         # y scratch
    candidates = [(1024, 512), (512, 512), (512, 256), (256, 256),
                  (128, 256), (128, 128), (64, 128), (8, 128)]
    headroom = 2 << 20  # leave room for compiler-internal scratch
    for tm, tn in candidates:
        tm_c, tn_c = min(tm, N), min(tn, N)   # full extent is always legal
        if usage(tm_c, tn_c) <= budget - headroom:
            return tm_c, tn_c
    return min(8, N), min(128, N)


def pairwise_bilinear(embeddings: jax.Array, weight: jax.Array, *,
                      compute_dtype=jnp.bfloat16, out_dtype=None,
                      tm: int | None = None, tn: int | None = None) -> jax.Array:
    """embeddings: (B, N, D); weight: (D, D) with PyTorch Linear semantics -> (B, N, N)."""
    B, N, D = embeddings.shape
    assert weight.shape == (D, D)

    # Pin the output dtype to the caller's dtype BEFORE the bf16 cast below.
    out_dtype = embeddings.dtype if out_dtype is None else out_dtype

    # Cast once in the wrapper: halves x_j re-stream / W DMA traffic and VMEM,
    # and removes per-step in-kernel VPU casts (biggest win on v5e, no bf16 VALU).
    x = embeddings.astype(compute_dtype)
    w = weight.astype(compute_dtype)

    cb = jnp.dtype(compute_dtype).itemsize
    ob = jnp.dtype(out_dtype).itemsize
    budget = _vmem_budget_bytes()

    auto_tm, auto_tn = _select_tiles(N, D, cb, ob, budget)
    tm = auto_tm if tm is None else min(tm, N)
    tn = auto_tn if tn is None else min(tn, N)

    gi, gj = pl.cdiv(N, tm), pl.cdiv(N, tn)
    grid = (B, gi, gj)

    # Small-D regime is output-writeback bound: bytes dominated by the B*N*N store.
    cost = pl.CostEstimate(
        flops=2 * B * N * D * D + 2 * B * N * N * D,
        transcendentals=0,
        bytes_accessed=(B * N * D * cb            # x_i streamed once
                        + B * gi * N * D * cb     # x_j re-streamed per row-block
                        + D * D * cb              # weight fetched once
                        + B * N * N * ob),        # output writeback
    )

    def build(single_buffer_weight: bool):
        w_kwargs = {"pipeline_mode": pl.Buffered(1)} if single_buffer_weight else {}
        return pl.pallas_call(
            _pairwise_bilinear_kernel,
            out_shape=jax.ShapeDtypeStruct((B, N, N), out_dtype),
            grid_spec=pltpu.PrefetchScalarGridSpec(
                num_scalar_prefetch=0,
                grid=grid,
                in_specs=[
                    # Row slab x_i: block index constant in j -> re-DMA skipped.
                    pl.BlockSpec((pl.Squeezed(), tm, D), lambda b, i, j: (b, i, 0)),
                    # Column slab x_j.
                    pl.BlockSpec((pl.Squeezed(), tn, D), lambda b, i, j: (b, j, 0)),
                    # Full weight, constant block -> single-buffered.
                    pl.BlockSpec((D, D), lambda b, i, j: (0, 0), **w_kwargs),
                ],
                out_specs=pl.BlockSpec((pl.Squeezed(), tm, tn), lambda b, i, j: (b, i, j)),
                scratch_shapes=[pltpu.VMEM((tm, D), compute_dtype)],
            ),
            compiler_params=pltpu.CompilerParams(
                # b, i independent (megacore shards them on v7x); j reuses the
                # cached y scratch so it must stay sequential on one core.
                dimension_semantics=("parallel", "parallel", "arbitrary"),
                vmem_limit_bytes=budget,
            ),
            cost_estimate=cost,
        )

    try:
        return build(single_buffer_weight=True)(x, x, w)
    except Exception:
        # Fallback for JAX versions that reject pipeline_mode=pl.Buffered(1):
        # identical kernel, default (double-buffered) weight block.
        return build(single_buffer_weight=False)(x, x, w)


if __name__ == "__main__":
    # Small shapes consistent with the module: batch=2, seq=8, input_size=32.
    B, N, D = 2, 8, 32

    key = jax.random.PRNGKey(0)
    k_x, k_w = jax.random.split(key)
    embeddings = jax.random.normal(k_x, (B, N, D), dtype=jnp.float32)
    # Deterministic synthetic Linear weight: shape (out_features, in_features) = (D, D).
    weight = jax.random.normal(k_w, (D, D), dtype=jnp.float32) * (1.0 / jnp.sqrt(D))

    out = pairwise_bilinear(embeddings, weight)
    out = jax.block_until_ready(out)
    assert out.shape == (B, N, N)
    assert out.dtype == embeddings.dtype  # output dtype pinned despite bf16 compute

    # Reference emulating the kernel's numerics (bf16 MXU inputs, f32 accumulation,
    # bf16-cached intermediate y).
    xb = embeddings.astype(jnp.bfloat16).astype(jnp.float32)
    wb = weight.astype(jnp.bfloat16).astype(jnp.float32)
    y_ref = jnp.einsum("bnd,md->bnm", xb, wb)                    # Linear(x) = x @ W.T
    y_ref = y_ref.astype(jnp.bfloat16).astype(jnp.float32)
    ref = jnp.einsum("bnk,bmk->bnm", y_ref, xb)                  # bmm(y, x^T)
    assert jnp.allclose(out, ref, atol=1e-2, rtol=1e-2), "mismatch vs bf16-emulated reference"

    # Sanity vs full-precision f32 reference (scale-normalized, loose bf16 tolerance).
    ref_f32 = jnp.einsum("bnd,md->bnm", embeddings, weight)
    ref_f32 = jnp.einsum("bnk,bmk->bnm", ref_f32, embeddings)
    scale = jnp.max(jnp.abs(ref_f32))
    assert jnp.max(jnp.abs(out - ref_f32)) <= 0.05 * scale, "mismatch vs f32 reference"

    print("KERNEL_OK")
</pallas_src>

<mosaic_0001>
module attributes {stable_mosaic.version = 11 : i64} {
  func.func @_pairwise_bilinear_kernel(%arg0: i32, %arg1: i32, %arg2: i32, %arg3: memref<1x8x32xbf16, #tpu.memory_space<vmem>>, %arg4: memref<1x8x32xbf16, #tpu.memory_space<vmem>>, %arg5: memref<32x32xbf16, #tpu.memory_space<vmem>>, %arg6: memref<1x8x8xf32, #tpu.memory_space<vmem>>, %arg7: memref<8x32xbf16, #tpu.memory_space<vmem>>) attributes {dimension_semantics = [#tpu.dimension_semantics<parallel>, #tpu.dimension_semantics<parallel>, #tpu.dimension_semantics<arbitrary>], iteration_bounds = array<i64: 2, 1, 1>, scalar_prefetch = 0 : i64, scratch_operands = 1 : i64, tpu.core_type = #tpu.core_type<tc>, window_params = [{transform_indices = @transform_0, window_bounds = array<i64: 1, 8, 32>}, {transform_indices = @transform_1, window_bounds = array<i64: 1, 8, 32>}, {pipeline_mode = #tpu.pipeline_mode<synchronous>, transform_indices = @transform_2, window_bounds = array<i64: 32, 32>}, {transform_indices = @transform_3, window_bounds = array<i64: 1, 8, 8>}]} {
    %c0_i32 = arith.constant 0 : i32
    %0 = arith.cmpi eq, %arg2, %c0_i32 : i32
    %1 = arith.extui %0 : i1 to i32
    %c0_i32_0 = arith.constant 0 : i32
    %2 = arith.cmpi ne, %1, %c0_i32_0 : i32
    scf.if %2 {
      %c0_8 = arith.constant 0 : index
      %c0_9 = arith.constant 0 : index
      %c0_10 = arith.constant 0 : index
      %10 = vector.load %arg3[%c0_8, %c0_9, %c0_10] : memref<1x8x32xbf16, #tpu.memory_space<vmem>>, vector<1x8x32xbf16>
      %11 = vector.shape_cast %10 : vector<1x8x32xbf16> to vector<8x32xbf16>
      %c0_11 = arith.constant 0 : index
      %c0_12 = arith.constant 0 : index
      %12 = vector.load %arg5[%c0_11, %c0_12] : memref<32x32xbf16, #tpu.memory_space<vmem>>, vector<32x32xbf16>
      %cst_13 = arith.constant dense<0.000000e+00> : vector<8x32xf32>
      %13 = tpu.matmul %11, %12, %cst_13 {dimension_numbers = #tpu.dot_dimension_numbers<[1], [1], [0], [0], [0, 0, 1, 0], [], []>} : vector<8x32xbf16>, vector<32x32xbf16>, vector<8x32xf32> -> vector<8x32xf32>
      %14 = arith.truncf %13 : vector<8x32xf32> to vector<8x32xbf16>
      %c0_14 = arith.constant 0 : index
      %c0_15 = arith.constant 0 : index
      %15 = vector.load %arg7[%c0_14, %c0_15] : memref<8x32xbf16, #tpu.memory_space<vmem>>, vector<8x32xbf16>
      tpu.vector_store %arg7[%c0_14, %c0_15], %14 {strides = array<i32>} : memref<8x32xbf16, #tpu.memory_space<vmem>>, vector<8x32xbf16>,
    } else {
    }
    %c0 = arith.constant 0 : index
    %c0_1 = arith.constant 0 : index
    %3 = vector.load %arg7[%c0, %c0_1] : memref<8x32xbf16, #tpu.memory_space<vmem>>, vector<8x32xbf16>
    %c0_2 = arith.constant 0 : index
    %c0_3 = arith.constant 0 : index
    %c0_4 = arith.constant 0 : index
    %4 = vector.load %arg4[%c0_2, %c0_3, %c0_4] : memref<1x8x32xbf16, #tpu.memory_space<vmem>>, vector<1x8x32xbf16>
    %5 = vector.shape_cast %4 : vector<1x8x32xbf16> to vector<8x32xbf16>
    %cst = arith.constant dense<0.000000e+00> : vector<8x8xf32>
    %6 = tpu.matmul %3, %5, %cst {dimension_numbers = #tpu.dot_dimension_numbers<[1], [1], [0], [0], [0, 0, 1, 0], [], []>} : vector<8x32xbf16>, vector<8x32xbf16>, vector<8x8xf32> -> vector<8x8xf32>
    %c0_5 = arith.constant 0 : index
    %c0_6 = arith.constant 0 : index
    %c0_7 = arith.constant 0 : index
    %7 = vector.load %arg6[%c0_5, %c0_6, %c0_7] : memref<1x8x8xf32, #tpu.memory_space<vmem>>, vector<1x8x8xf32>
    %8 = vector.shape_cast %7 : vector<1x8x8xf32> to vector<8x8xf32>
    %9 = vector.shape_cast %6 : vector<8x8xf32> to vector<1x8x8xf32>
    tpu.vector_store %arg6[%c0_5, %c0_6, %c0_7], %9 {strides = array<i32>} : memref<1x8x8xf32, #tpu.memory_space<vmem>>, vector<1x8x8xf32>,
    return
  }
  func.func @transform_0(%arg0: i32, %arg1: i32, %arg2: i32) -> (i32, i32, i32) {
    %c0_i32 = arith.constant 0 : i32
    %c0_i32_0 = arith.constant 0 : i32
    return %arg0, %arg1, %c0_i32 : i32, i32, i32
  }
  func.func @transform_1(%arg0: i32, %arg1: i32, %arg2: i32) -> (i32, i32, i32) {
    %c0_i32 = arith.constant 0 : i32
    %c0_i32_0 = arith.constant 0 : i32
    return %arg0, %arg2, %c0_i32 : i32, i32, i32
  }
  func.func @transform_2(%arg0: i32, %arg1: i32, %arg2: i32) -> (i32, i32) {
    %c0_i32 = arith.constant 0 : i32
    %c0_i32_0 = arith.constant 0 : i32
    %c0_i32_1 = arith.constant 0 : i32
    return %c0_i32, %c0_i32_0 : i32, i32
  }
  func.func @transform_3(%arg0: i32, %arg1: i32, %arg2: i32) -> (i32, i32, i32) {
    %c0_i32 = arith.constant 0 : i32
    return %arg0, %arg1, %arg2 : i32, i32, i32
  }
}

module attributes {stable_mosaic.version = 11 : i64} {
  func.func @_pairwise_bilinear_kernel(%arg0: i32, %arg1: i32, %arg2: i32, %arg3: memref<1x8x32xbf16, #tpu.memory_space<vmem>>, %arg4: memref<1x8x32xbf16, #tpu.memory_space<vmem>>, %arg5: memref<32x32xbf16, #tpu.memory_space<vmem>>, %arg6: memref<1x8x8xf32, #tpu.memory_space<vmem>>, %arg7: memref<8x32xbf16, #tpu.memory_space<vmem>>) attributes {dimension_semantics = [#tpu.dimension_semantics<parallel>, #tpu.dimension_semantics<parallel>, #tpu.dimension_semantics<arbitrary>], iteration_bounds = array<i64: 2, 1, 1>, scalar_prefetch = 0 : i64, scratch_operands = 1 : i64, tpu.core_type = #tpu.core_type<tc>, window_params = [{transform_indices = @transform_0, window_bounds = array<i64: 1, 8, 32>}, {transform_indices = @transform_1, window_bounds = array<i64: 1, 8, 32>}, {pipeline_mode = #tpu.pipeline_mode<synchronous>, transform_indices = @transform_2, window_bounds = array<i64: 32, 32>}, {transform_indices = @transform_3, window_bounds = array<i64: 1, 8, 8>}]} {
    %c0_i32 = arith.constant 0 : i32
    %0 = arith.cmpi eq, %arg2, %c0_i32 : i32
    %1 = arith.extui %0 : i1 to i32
    %c0_i32_0 = arith.constant 0 : i32
    %2 = arith.cmpi ne, %1, %c0_i32_0 : i32
    scf.if %2 {
      %c0_8 = arith.constant 0 : index
      %c0_9 = arith.constant 0 : index
      %c0_10 = arith.constant 0 : index
      %10 = vector.load %arg3[%c0_8, %c0_9, %c0_10] : memref<1x8x32xbf16, #tpu.memory_space<vmem>>, vector<1x8x32xbf16>
      %11 = vector.shape_cast %10 : vector<1x8x32xbf16> to vector<8x32xbf16>
      %c0_11 = arith.constant 0 : index
      %c0_12 = arith.constant 0 : index
      %12 = vector.load %arg5[%c0_11, %c0_12] : memref<32x32xbf16, #tpu.memory_space<vmem>>, vector<32x32xbf16>
      %cst_13 = arith.constant dense<0.000000e+00> : vector<8x32xf32>
      %13 = tpu.matmul %11, %12, %cst_13 {dimension_numbers = #tpu.dot_dimension_numbers<[1], [1], [0], [0], [0, 0, 1, 0], [], []>} : vector<8x32xbf16>, vector<32x32xbf16>, vector<8x32xf32> -> vector<8x32xf32>
      %14 = arith.truncf %13 : vector<8x32xf32> to vector<8x32xbf16>
      %c0_14 = arith.constant 0 : index
      %c0_15 = arith.constant 0 : index
      %15 = vector.load %arg7[%c0_14, %c0_15] : memref<8x32xbf16, #tpu.memory_space<vmem>>, vector<8x32xbf16>
      tpu.vector_store %arg7[%c0_14, %c0_15], %14 {strides = array<i32>} : memref<8x32xbf16, #tpu.memory_space<vmem>>, vector<8x32xbf16>,
    } else {
    }
    %c0 = arith.constant 0 : index
    %c0_1 = arith.constant 0 : index
    %3 = vector.load %arg7[%c0, %c0_1] : memref<8x32xbf16, #tpu.memory_space<vmem>>, vector<8x32xbf16>
    %c0_2 = arith.constant 0 : index
    %c0_3 = arith.constant 0 : index
    %c0_4 = arith.constant 0 : index
    %4 = vector.load %arg4[%c0_2, %c0_3, %c0_4] : memref<1x8x32xbf16, #tpu.memory_space<vmem>>, vector<1x8x32xbf16>
    %5 = vector.shape_cast %4 : vector<1x8x32xbf16> to vector<8x32xbf16>
    %cst = arith.constant dense<0.000000e+00> : vector<8x8xf32>
    %6 = tpu.matmul %3, %5, %cst {dimension_numbers = #tpu.dot_dimension_numbers<[1], [1], [0], [0], [0, 0, 1, 0], [], []>} : vector<8x32xbf16>, vector<8x32xbf16>, vector<8x8xf32> -> vector<8x8xf32>
    %c0_5 = arith.constant 0 : index
    %c0_6 = arith.constant 0 : index
    %c0_7 = arith.constant 0 : index
    %7 = vector.load %arg6[%c0_5, %c0_6, %c0_7] : memref<1x8x8xf32, #tpu.memory_space<vmem>>, vector<1x8x8xf32>
    %8 = vector.shape_cast %7 : vector<1x8x8xf32> to vector<8x8xf32>
    %9 = vector.shape_cast %6 : vector<8x8xf32> to vector<1x8x8xf32>
    tpu.vector_store %arg6[%c0_5, %c0_6, %c0_7], %9 {strides = array<i32>} : memref<1x8x8xf32, #tpu.memory_space<vmem>>, vector<1x8x8xf32>,
    return
  }
  func.func @transform_0(%arg0: i32, %arg1: i32, %arg2: i32) -> (i32, i32, i32) {
    %c0_i32 = arith.constant 0 : i32
    %c0_i32_0 = arith.constant 0 : i32
    return %arg0, %arg1, %c0_i32 : i32, i32, i32
  }
  func.func @transform_1(%arg0: i32, %arg1: i32, %arg2: i32) -> (i32, i32, i32) {
    %c0_i32 = arith.constant 0 : i32
    %c0_i32_0 = arith.constant 0 : i32
    return %arg0, %arg2, %c0_i32 : i32, i32, i32
  }
  func.func @transform_2(%arg0: i32, %arg1: i32, %arg2: i32) -> (i32, i32) {
    %c0_i32 = arith.constant 0 : i32
    %c0_i32_0 = arith.constant 0 : i32
    %c0_i32_1 = arith.constant 0 : i32
    return %c0_i32, %c0_i32_0 : i32, i32
  }
  func.func @transform_3(%arg0: i32, %arg1: i32, %arg2: i32) -> (i32, i32, i32) {
    %c0_i32 = arith.constant 0 : i32
    return %arg0, %arg1, %arg2 : i32, i32, i32
  }
}

</mosaic_0001>

<bundles_post_ra>
// kernel: tpu_custom_call.1
= control target key start
LH: loop header
LB: loop body
LE: loop exit
PB: predicated region body
PF: predicated region fallthrough
CT: control target
= control target key end

     0   :  { %s950_s0 = inlined_call_operand.hbm [shape: bf16[2,8,32], index: 0, kind: input, shape index: {}]   ;;  %s951_s1 = inlined_call_operand.hbm [shape: bf16[2,8,32], index: 1, kind: input, shape index: {}]   ;;  %s952_s2 = inlined_call_operand.hbm [shape: bf16[32,32], index: 2, kind: input, shape index: {}]   ;;  %s953_s3 = inlined_call_operand.hbm [shape: f32[2,8,8], index: 3, kind: output, shape index: {}]  }
   0x1   :  { %956 = sst [smem:[#allocation17_spill]] %s952_s2 }
   0x2   :  { %8 = vsyncpa [#allocation4], 0 }
   0x3   :  { %10 = vsyncpa [#allocation4 + $0x1], 0 }
   0x4   :  { %11 = vsyncpa [#allocation7], 0 }
   0x5   :  { %13 = vsyncpa [#allocation7 + $0x1], 0 }
   0x6   :  { %14 = vsyncpa [#allocation5], 0 }
   0x7   :  { %16 = vsyncpa [#allocation5 + $0x1], 0  ;;  %s792_s12 = smov 0   ;;  %s794_s13 = smov 0  }
   0x8   :  { %s796_s14 = smov 0   ;;  %s798_s15 = smov 0  }
   0x9   :  { %s800_s16 = smov 0   ;;  %s802_s17 = smov 0  }
   0xa LB: > { %957 = sst [smem:[#allocation14_spill]] %s763_s16  ;;  %s823_s18 = sadd.s32 4294967295, %s767_s17   ;;  %s767_s17 = sphi %s802_s17, %s22_s17   ;;  %s763_s16 = sphi %s800_s16, %s968_s16   ;;  %s759_s15 = sphi %s798_s15, %s967_s15   ;;  %s755_s14 = sphi %s796_s14, %s971_s14   ;;  %s751_s13 = sphi %s794_s13, %s970_s13   ;;  %s747_s12 = sphi %s792_s12, %s969_s12  }
   0xb   : > { %p479_p0 = scmp.ge.s32.totalorder %s767_s17, 1  ;;  %p64_p1 = scmp.eq.s32.totalorder %s823_s18, 0 }
   0xc   : > { %p153_p2 = scmp.lt.s32.totalorder %s767_s17, 3  ;;  %s958_s2 = sld [smem:[#allocation17_spill]] }
   0xd   : > { %s769_s23 = smov [#allocation8]   ;;  %p481_p6 = scmp.ge.s32.totalorder %s767_s17, 2 }
   0xe   : > { %p831_p3 = pnand %p479_p0, %p153_p2  ;;  %s166_s24 = sshll.u32 %s769_s23, 4  ;;  %s167_s24 = int_to_ptr.vmem [resolvable:$true] %s166_s24 }
   0xf   : > { %s770_s25 = smov 64   ;;  %s771_s26 = smov 4  }
  0x10   : > { %p517_p4 = pneg %p831_p3  ;;  %s478_s27 = sadd.s32 4294967294, %s767_s17  }
  0x11   : > { %s41_s28 = sadd.s32 1, %s763_s16  ;;  %s50_s29 = sadd.s32 1, %s755_s14 }
  0x12   : > { %s164_s21 = sshll.u32 %s958_s2, 4  ;;  %p518_p5 = pnand %p517_p4, %p64_p1  ;;  %s165_s21 = int_to_ptr.hbm [resolvable:$true] %s164_s21 }
  0x13   : > { %p43_p7 = scmp.ge.s32.totalorder %s41_s28, 2  ;;  %p57_p8 = scmp.ne.s32.totalorder %s755_s14, %s751_s13 }
  0x14   : > { %520 = dma.hbm_to_vmem [thread:$0]  (!%p518_p5), %s165_s21, 256, %s167_s24, [#allocation7], %s770_s25, %s770_s25, %s771_s26  }
  0x15   : > { %p58_p9 = scmp.eq.s32.totalorder %s767_s17, 0  ;;  %p63_p10 = scmp.ne.s32.totalorder %s751_s13, %s747_s12 }
  0x16   : > { %s973_s28 = smov (%p43_p7, %s41_s28), 0  ;;  %p140_p13 = scmp.eq.s32.totalorder %s823_s18, 1 }
  0x17   : > { %960 = sst [smem:[#allocation15_spill]] %s973_s28  ;;  %p850_p11 = por %p58_p9, %p57_p8 }
  0x18   : > { %p856_p12 = por %p64_p1, %p63_p10  ;;  %s45_s5 = ssub.s32 %s763_s16, %s973_s28 }
  0x19   : > { %p48_p0 = scmp.eq.s32.totalorder %s45_s5, 0  ;;  %p146_p2 = scmp.eq.s32.totalorder %s478_s27, 1 }
  0x1a   : > { %p863_p4 = por %p140_p13, %p57_p8  ;;  %p533_p5 = scmp.lt.s32.totalorder %s767_s17, 2 }
  0x1b   : > { %s869_s7 = scalar_select %p48_p0, %s755_s14, %s50_s29  }
  0x1c   : > { %p871_p7 = por %p146_p2, %p63_p10  ;;  %s180_s9 = sand.u32 1, %s755_s14  }
  0x1d   : > { %964 = sst [smem:[#allocation16_spill]] %s869_s7  ;;  %s482_s10 = sshll.u32 %s180_s9, 2 }
  0x1e   : > { %s483_s11 = sshll.u32 %s763_s16, 2  ;;  %s184_s23 = scalar_lea.vmem [#allocation3], %s482_s10 }
  0x1f   : > { %s189_s21 = scalar_lea.hbm %s950_s0, %s483_s11  ;;  %s193_s24 = sshll.u32 %s184_s23, 4  ;;  %s194_s24 = int_to_ptr.vmem [resolvable:$true] %s193_s24 }
  0x20   : > { %s191_s25 = sshll.u32 %s189_s21, 4  ;;  %p522_p8 = pnand %p533_p5, %p850_p11  ;;  %s192_s25 = int_to_ptr.hbm [resolvable:$true] %s191_s25 }
  0x21   : > { %s209_s29 = scalar_lea.hbm %s951_s1, %s483_s11  ;;  %s200_s5 = sand.u32 1, %s767_s17  }
  0x22   : > { %s181_s2 = scalar_lea.sflag [#allocation4], %s180_s9  ;;  %s211_s28 = sshll.u32 %s209_s29, 4  ;;  %s212_s28 = int_to_ptr.hbm [resolvable:$true] %s211_s28 }
  0x23   : > { %524 = dma.hbm_to_vmem [thread:$0]  (!%p522_p8), %s192_s25, 64, %s194_s24, %s181_s2  }
  0x24   : > { %s204_s16 = scalar_lea.vmem [#allocation6], %s482_s10  ;;  %s201_s19 = scalar_lea.sflag [#allocation7], %s200_s5 }
  0x25   : > { %s213_s7 = sshll.u32 %s204_s16, 4  ;;  %222 = sbr.rel (%p831_p3) target bundleno = 335 (0x14f), region = 32  ;;  %s214_s7 = int_to_ptr.vmem [resolvable:$true] %s213_s7 }
  0x26   : > { %527 = dma.hbm_to_vmem [thread:$0]  (!%p522_p8), %s212_s28, 64, %s214_s7, %s201_s19  }
  0x27   : > { %s889_s30 = sand.u32 (!%p831_p3), 1, %s751_s13  }
  0x28   : > { %s487_s11 = sshll.u32 (!%p831_p3), %s889_s30, 2  ;;  %s225_s20 = scalar_lea.sflag (!%p831_p3), [#allocation4], %s889_s30 }
  0x29   : > { %s228_s9 = scalar_lea.vmem (!%p831_p3), [#allocation3], %s487_s11 }
  0x2a   : > { %730 = dma.done.wait (%p856_p12), %s225_s20, 64  }
  0x2b   : > { %732 = vsyncadd (%p856_p12), %s225_s20, 4294967232  ;;  %s234_s2 = sand.u32 1, %s823_s18   ;;  %s238_s22 = scalar_lea.vmem [#allocation6], %s487_s11 }
  0x2c   : > { %s235_s16 = scalar_lea.sflag [#allocation7], %s234_s2 }
  0x2d   : > { %734 = dma.done.wait (%p856_p12), %s235_s16, 64  }
  0x2e   : > { %736 = vsyncadd (%p856_p12), %s235_s16, 4294967232 }
  0x2f   : > { %738 = dma.done.wait (%p64_p1), [#allocation7], 256  }
  0x30   : > { %740 = vsyncadd (%p64_p1), [#allocation7], 4294967040  ;;  %vm292_vm0 = vcmask 261120   ;;  %v506_v0 = vld [vmem:[#allocation8 + $0x8] sm:$0xff]  ;;  %v505_v2 = vld [vmem:[#allocation8] sm:$0xff]  ;;  %vm316_vm1 = vcmask 257024  }
  0x31   : > { %v300_v1 = vsel %vm292_vm0, %v506_v0, 0  ;;  %v297_v3 = vsel %vm292_vm0, %v505_v2, 0  ;;  %v277_v4 = vld [vmem:[%s228_s9] sm:$0xf]  ;;  %v319_v5 = vld [vmem:[%s238_s22] sm:$0xf] }
  0x32   : > { %308 = vmatpush.bf16.xpose.msra.mxu0 %v300_v1  ;;  %v325_v6 = vsel %vm292_vm0, %v319_v5, 0  ;;  %s502_s18 = sshll.u32 %s759_s15, 3  ;;  %s490_s28 = sshll.u32 %s889_s30, 3  ;;  %vm340_vm2 = vcmask 64512  }
  0x33   : > { %334 = vmatpush.bf16.xpose.msra.mxu1 %v325_v6  ;;  %s355_s10 = scalar_lea.hbm %s953_s3, %s502_s18  ;;  %s271_s21 = scalar_lea.vmem [#allocation9], %s490_s28 }
  0x34   : > { %s357_s23 = sshll.u32 %s271_s21, 4  ;;  %s359_s24 = sshll.u32 %s355_s10, 4  ;;  %s358_s23 = int_to_ptr.vmem [resolvable:$true] %s357_s23  ;;  %s360_s24 = int_to_ptr.hbm [resolvable:$true] %s359_s24 }
  0x35   : > { %s343_s25 = scalar_lea.sflag [#allocation5], %s889_s30  ;;  %s691_s26 = sshra.s32 %s360_s24, 4  ;;  %s692_s26 = int_to_ptr.hbm [resolvable:$true] %s691_s26 }
  0x36   : > { %s693_s27 = scalar_lea.hbm %s692_s26, 8  ;;  %s697_s5 = scalar_lea.hbm %s953_s3, 16 }
  0x37   : > { %p694_p1 = scmp.ne.s32.totalorder %s692_s26, %s693_s27  ;;  %p698_p10 = scmp.lt.s32.totalorder %s692_s26, %s953_s3 }
  0x38   : > { %p699_p11 = scmp.lt.s32.totalorder %s697_s5, %s693_s27 }
  0x39   : > { %p695_p3 = pnand %p694_p1, %p863_p4 }
  0x3a   : > { %309 = vmatpush.bf16.xpose.msra.mxu0 %v297_v3  ;;  %p700_p12 = por %p699_p11, %p698_p10 }
  0x3b   : > { %p696_p9 = pneg %p695_p3 }
  0x3d   : > { %p701_p13 = pnand %p700_p12, %p696_p9 }
  0x41   : > { %499 = vmatmul.msk.bf16.vlgmr.msra.gmra.mxu0 %vm292_vm0, %v277_v4 }
  0xbe   : > { %v311_v7 = vpop.f32.mrf.mxu0 }
  0xbf   : > { %v315_v8 = vpack.c.bf16 %v311_v7, %v311_v7 }
  0xc1   : > { %317 = vst.msk [vmem:[#allocation2] sm:$0xf] %vm316_vm1, %v315_v8 }
  0xc6   : > { %v313_v9 = vpop.f32.mrf.mxu0 }
  0xc8   : > { %v318_v10 = vld [vmem:[#allocation2] sm:$0xf] }
  0xc9   : > { %500 = vmatmul.msk.bf16.vlgmr.msra.gmra.mxu1 %vm292_vm0, %v318_v10 }
 0x146   : > { %v336_v11 = vpop.f32.mrf.mxu1 }
 0x147   : > { %341 = vst.msk [vmem:[%s271_s21] sm:$0xff] %vm340_vm2, %v336_v11 }
 0x148   : > { %704 = shalt.err (!%p701_p13)
}
 0x149   : > { %515 = dma.vmem_to_hbm [thread:$0]  (%p863_p4), %s358_s23, 128, %s360_s24, %s343_s25  }
 0x14e   : > { %v338_v12 = vpop.f32.mrf.mxu1 }
 0x14f PF: > { %s371_s30 = sand.u32 1, %s747_s12   ;;  %p529_p0 = pnand %p481_p6, %p871_p7 }
 0x150   : > { %s372_s20 = scalar_lea.sflag [#allocation5], %s371_s30 }
 0x151   : > { %p530_p2 = pneg %p529_p0 }
 0x153   : > { %742 = dma.done.wait (%p530_p2), %s372_s20, 128  }
 0x154   : > { %744 = vsyncadd (%p530_p2), %s372_s20, 4294967168  ;;  %s22_s17 = sadd.s32 1, %s767_s17   ;;  %s966_s6 = sld [smem:[#allocation16_spill]] }
 0x155   : > { %p19_p5 = scmp.ge.s32.totalorder %s22_s17, 4   ;;  %s967_s15 = sld [smem:[#allocation14_spill]] }
 0x156   : > { %s968_s16 = sld [smem:[#allocation15_spill]]  ;;  %s969_s12 = smov %s751_s13 }
 0x157   : > { %s970_s13 = smov %s755_s14  ;;  %21 = sbr.rel (!%p19_p5) target bundleno = 10 (0xa), region = 98 }
 0x15a   : > { %s971_s14 = smov %s966_s6 }
 0x15c   :  { %378 = vsyncpa [#allocation4], 1 }
 0x15d   :  { %380 = vsyncpa [#allocation4 + $0x1], 1 }
 0x15e   :  { %381 = vsyncpa [#allocation7], 1 }
 0x15f   :  { %383 = vsyncpa [#allocation7 + $0x1], 1 }
 0x160   :  { %384 = vsyncpa [#allocation5], 1 }
 0x161   :  { %386 = vsyncpa [#allocation5 + $0x1], 1 }

// kernel: tpu_custom_call.1
= control target key start
LH: loop header
LB: loop body
LE: loop exit
PB: predicated region body
PF: predicated region fallthrough
CT: control target
= control target key end

     0   :  { %s950_s0 = inlined_call_operand.hbm [shape: bf16[2,8,32], index: 0, kind: input, shape index: {}]   ;;  %s951_s1 = inlined_call_operand.hbm [shape: bf16[2,8,32], index: 1, kind: input, shape index: {}]   ;;  %s952_s2 = inlined_call_operand.hbm [shape: bf16[32,32], index: 2, kind: input, shape index: {}]   ;;  %s953_s3 = inlined_call_operand.hbm [shape: f32[2,8,8], index: 3, kind: output, shape index: {}]  }
   0x1   :  { %956 = sst [smem:[#allocation17_spill]] %s952_s2 }
   0x2   :  { %8 = vsyncpa [#allocation4], 0 }
   0x3   :  { %10 = vsyncpa [#allocation4 + $0x1], 0 }
   0x4   :  { %11 = vsyncpa [#allocation7], 0 }
   0x5   :  { %13 = vsyncpa [#allocation7 + $0x1], 0 }
   0x6   :  { %14 = vsyncpa [#allocation5], 0 }
   0x7   :  { %16 = vsyncpa [#allocation5 + $0x1], 0  ;;  %s792_s12 = smov 0   ;;  %s794_s13 = smov 0  }
   0x8   :  { %s796_s14 = smov 0   ;;  %s798_s15 = smov 0  }
   0x9   :  { %s800_s16 = smov 0   ;;  %s802_s17 = smov 0  }
   0xa LB: > { %957 = sst [smem:[#allocation14_spill]] %s763_s16  ;;  %s823_s18 = sadd.s32 4294967295, %s767_s17   ;;  %s767_s17 = sphi %s802_s17, %s22_s17   ;;  %s763_s16 = sphi %s800_s16, %s968_s16   ;;  %s759_s15 = sphi %s798_s15, %s967_s15   ;;  %s755_s14 = sphi %s796_s14, %s971_s14   ;;  %s751_s13 = sphi %s794_s13, %s970_s13   ;;  %s747_s12 = sphi %s792_s12, %s969_s12  }
   0xb   : > { %p479_p0 = scmp.ge.s32.totalorder %s767_s17, 1  ;;  %p64_p1 = scmp.eq.s32.totalorder %s823_s18, 0 }
   0xc   : > { %p153_p2 = scmp.lt.s32.totalorder %s767_s17, 3  ;;  %s958_s2 = sld [smem:[#allocation17_spill]] }
   0xd   : > { %s769_s23 = smov [#allocation8]   ;;  %p481_p6 = scmp.ge.s32.totalorder %s767_s17, 2 }
   0xe   : > { %p831_p3 = pnand %p479_p0, %p153_p2  ;;  %s166_s24 = sshll.u32 %s769_s23, 4  ;;  %s167_s24 = int_to_ptr.vmem [resolvable:$true] %s166_s24 }
   0xf   : > { %s770_s25 = smov 64   ;;  %s771_s26 = smov 4  }
  0x10   : > { %p517_p4 = pneg %p831_p3  ;;  %s478_s27 = sadd.s32 4294967294, %s767_s17  }
  0x11   : > { %s41_s28 = sadd.s32 1, %s763_s16  ;;  %s50_s29 = sadd.s32 1, %s755_s14 }
  0x12   : > { %s164_s21 = sshll.u32 %s958_s2, 4  ;;  %p518_p5 = pnand %p517_p4, %p64_p1  ;;  %s165_s21 = int_to_ptr.hbm [resolvable:$true] %s164_s21 }
  0x13   : > { %p43_p7 = scmp.ge.s32.totalorder %s41_s28, 2  ;;  %p57_p8 = scmp.ne.s32.totalorder %s755_s14, %s751_s13 }
  0x14   : > { %520 = dma.hbm_to_vmem [thread:$0]  (!%p518_p5), %s165_s21, 256, %s167_s24, [#allocation7], %s770_s25, %s770_s25, %s771_s26  }
  0x15   : > { %p58_p9 = scmp.eq.s32.totalorder %s767_s17, 0  ;;  %p63_p10 = scmp.ne.s32.totalorder %s751_s13, %s747_s12 }
  0x16   : > { %s973_s28 = smov (%p43_p7, %s41_s28), 0  ;;  %p140_p13 = scmp.eq.s32.totalorder %s823_s18, 1 }
  0x17   : > { %960 = sst [smem:[#allocation15_spill]] %s973_s28  ;;  %p850_p11 = por %p58_p9, %p57_p8 }
  0x18   : > { %p856_p12 = por %p64_p1, %p63_p10  ;;  %s45_s5 = ssub.s32 %s763_s16, %s973_s28 }
  0x19   : > { %p48_p0 = scmp.eq.s32.totalorder %s45_s5, 0  ;;  %p146_p2 = scmp.eq.s32.totalorder %s478_s27, 1 }
  0x1a   : > { %p863_p4 = por %p140_p13, %p57_p8  ;;  %p533_p5 = scmp.lt.s32.totalorder %s767_s17, 2 }
  0x1b   : > { %s869_s7 = scalar_select %p48_p0, %s755_s14, %s50_s29  }
  0x1c   : > { %p871_p7 = por %p146_p2, %p63_p10  ;;  %s180_s9 = sand.u32 1, %s755_s14  }
  0x1d   : > { %964 = sst [smem:[#allocation16_spill]] %s869_s7  ;;  %s482_s10 = sshll.u32 %s180_s9, 2 }
  0x1e   : > { %s483_s11 = sshll.u32 %s763_s16, 2  ;;  %s184_s23 = scalar_lea.vmem [#allocation3], %s482_s10 }
  0x1f   : > { %s189_s21 = scalar_lea.hbm %s950_s0, %s483_s11  ;;  %s193_s24 = sshll.u32 %s184_s23, 4  ;;  %s194_s24 = int_to_ptr.vmem [resolvable:$true] %s193_s24 }
  0x20   : > { %s191_s25 = sshll.u32 %s189_s21, 4  ;;  %p522_p8 = pnand %p533_p5, %p850_p11  ;;  %s192_s25 = int_to_ptr.hbm [resolvable:$true] %s191_s25 }
  0x21   : > { %s209_s29 = scalar_lea.hbm %s951_s1, %s483_s11  ;;  %s200_s5 = sand.u32 1, %s767_s17  }
  0x22   : > { %s181_s2 = scalar_lea.sflag [#allocation4], %s180_s9  ;;  %s211_s28 = sshll.u32 %s209_s29, 4  ;;  %s212_s28 = int_to_ptr.hbm [resolvable:$true] %s211_s28 }
  0x23   : > { %524 = dma.hbm_to_vmem [thread:$0]  (!%p522_p8), %s192_s25, 64, %s194_s24, %s181_s2  }
  0x24   : > { %s204_s16 = scalar_lea.vmem [#allocation6], %s482_s10  ;;  %s201_s19 = scalar_lea.sflag [#allocation7], %s200_s5 }
  0x25   : > { %s213_s7 = sshll.u32 %s204_s16, 4  ;;  %222 = sbr.rel (%p831_p3) target bundleno = 335 (0x14f), region = 32  ;;  %s214_s7 = int_to_ptr.vmem [resolvable:$true] %s213_s7 }
  0x26   : > { %527 = dma.hbm_to_vmem [thread:$0]  (!%p522_p8), %s212_s28, 64, %s214_s7, %s201_s19  }
  0x27   : > { %s889_s30 = sand.u32 (!%p831_p3), 1, %s751_s13  }
  0x28   : > { %s487_s11 = sshll.u32 (!%p831_p3), %s889_s30, 2  ;;  %s225_s20 = scalar_lea.sflag (!%p831_p3), [#allocation4], %s889_s30 }
  0x29   : > { %s228_s9 = scalar_lea.vmem (!%p831_p3), [#allocation3], %s487_s11 }
  0x2a   : > { %730 = dma.done.wait (%p856_p12), %s225_s20, 64  }
  0x2b   : > { %732 = vsyncadd (%p856_p12), %s225_s20, 4294967232  ;;  %s234_s2 = sand.u32 1, %s823_s18   ;;  %s238_s22 = scalar_lea.vmem [#allocation6], %s487_s11 }
  0x2c   : > { %s235_s16 = scalar_lea.sflag [#allocation7], %s234_s2 }
  0x2d   : > { %734 = dma.done.wait (%p856_p12), %s235_s16, 64  }
  0x2e   : > { %736 = vsyncadd (%p856_p12), %s235_s16, 4294967232 }
  0x2f   : > { %738 = dma.done.wait (%p64_p1), [#allocation7], 256  }
  0x30   : > { %740 = vsyncadd (%p64_p1), [#allocation7], 4294967040  ;;  %vm292_vm0 = vcmask 261120   ;;  %v506_v0 = vld [vmem:[#allocation8 + $0x8] sm:$0xff]  ;;  %v505_v2 = vld [vmem:[#allocation8] sm:$0xff]  ;;  %vm316_vm1 = vcmask 257024  }
  0x31   : > { %v300_v1 = vsel %vm292_vm0, %v506_v0, 0  ;;  %v297_v3 = vsel %vm292_vm0, %v505_v2, 0  ;;  %v277_v4 = vld [vmem:[%s228_s9] sm:$0xf]  ;;  %v319_v5 = vld [vmem:[%s238_s22] sm:$0xf] }
  0x32   : > { %308 = vmatpush.bf16.xpose.msra.mxu0 %v300_v1  ;;  %v325_v6 = vsel %vm292_vm0, %v319_v5, 0  ;;  %s502_s18 = sshll.u32 %s759_s15, 3  ;;  %s490_s28 = sshll.u32 %s889_s30, 3  ;;  %vm340_vm2 = vcmask 64512  }
  0x33   : > { %334 = vmatpush.bf16.xpose.msra.mxu1 %v325_v6  ;;  %s355_s10 = scalar_lea.hbm %s953_s3, %s502_s18  ;;  %s271_s21 = scalar_lea.vmem [#allocation9], %s490_s28 }
  0x34   : > { %s357_s23 = sshll.u32 %s271_s21, 4  ;;  %s359_s24 = sshll.u32 %s355_s10, 4  ;;  %s358_s23 = int_to_ptr.vmem [resolvable:$true] %s357_s23  ;;  %s360_s24 = int_to_ptr.hbm [resolvable:$true] %s359_s24 }
  0x35   : > { %s343_s25 = scalar_lea.sflag [#allocation5], %s889_s30  ;;  %s691_s26 = sshra.s32 %s360_s24, 4  ;;  %s692_s26 = int_to_ptr.hbm [resolvable:$true] %s691_s26 }
  0x36   : > { %s693_s27 = scalar_lea.hbm %s692_s26, 8  ;;  %s697_s5 = scalar_lea.hbm %s953_s3, 16 }
  0x37   : > { %p694_p1 = scmp.ne.s32.totalorder %s692_s26, %s693_s27  ;;  %p698_p10 = scmp.lt.s32.totalorder %s692_s26, %s953_s3 }
  0x38   : > { %p699_p11 = scmp.lt.s32.totalorder %s697_s5, %s693_s27 }
  0x39   : > { %p695_p3 = pnand %p694_p1, %p863_p4 }
  0x3a   : > { %309 = vmatpush.bf16.xpose.msra.mxu0 %v297_v3  ;;  %p700_p12 = por %p699_p11, %p698_p10 }
  0x3b   : > { %p696_p9 = pneg %p695_p3 }
  0x3d   : > { %p701_p13 = pnand %p700_p12, %p696_p9 }
  0x41   : > { %499 = vmatmul.msk.bf16.vlgmr.msra.gmra.mxu0 %vm292_vm0, %v277_v4 }
  0xbe   : > { %v311_v7 = vpop.f32.mrf.mxu0 }
  0xbf   : > { %v315_v8 = vpack.c.bf16 %v311_v7, %v311_v7 }
  0xc1   : > { %317 = vst.msk [vmem:[#allocation2] sm:$0xf] %vm316_vm1, %v315_v8 }
  0xc6   : > { %v313_v9 = vpop.f32.mrf.mxu0 }
  0xc8   : > { %v318_v10 = vld [vmem:[#allocation2] sm:$0xf] }
  0xc9   : > { %500 = vmatmul.msk.bf16.vlgmr.msra.gmra.mxu1 %vm292_vm0, %v318_v10 }
 0x146   : > { %v336_v11 = vpop.f32.mrf.mxu1 }
 0x147   : > { %341 = vst.msk [vmem:[%s271_s21] sm:$0xff] %vm340_vm2, %v336_v11 }
 0x148   : > { %704 = shalt.err (!%p701_p13)
}
 0x149   : > { %515 = dma.vmem_to_hbm [thread:$0]  (%p863_p4), %s358_s23, 128, %s360_s24, %s343_s25  }
 0x14e   : > { %v338_v12 = vpop.f32.mrf.mxu1 }
 0x14f PF: > { %s371_s30 = sand.u32 1, %s747_s12   ;;  %p529_p0 = pnand %p481_p6, %p871_p7 }
 0x150   : > { %s372_s20 = scalar_lea.sflag [#allocation5], %s371_s30 }
 0x151   : > { %p530_p2 = pneg %p529_p0 }
 0x153   : > { %742 = dma.done.wait (%p530_p2), %s372_s20, 128  }
 0x154   : > { %744 = vsyncadd (%p530_p2), %s372_s20, 4294967168  ;;  %s22_s17 = sadd.s32 1, %s767_s17   ;;  %s966_s6 = sld [smem:[#allocation16_spill]] }
 0x155   : > { %p19_p5 = scmp.ge.s32.totalorder %s22_s17, 4   ;;  %s967_s15 = sld [smem:[#allocation14_spill]] }
 0x156   : > { %s968_s16 = sld [smem:[#allocation15_spill]]  ;;  %s969_s12 = smov %s751_s13 }
 0x157   : > { %s970_s13 = smov %s755_s14  ;;  %21 = sbr.rel (!%p19_p5) target bundleno = 10 (0xa), region = 98 }
 0x15a   : > { %s971_s14 = smov %s966_s6 }
 0x15c   :  { %378 = vsyncpa [#allocation4], 1 }
 0x15d   :  { %380 = vsyncpa [#allocation4 + $0x1], 1 }
 0x15e   :  { %381 = vsyncpa [#allocation7], 1 }
 0x15f   :  { %383 = vsyncpa [#allocation7 + $0x1], 1 }
 0x160   :  { %384 = vsyncpa [#allocation5], 1 }
 0x161   :  { %386 = vsyncpa [#allocation5 + $0x1], 1 }

</bundles_post_ra>
